<compile_context>
chip_gen: v7x
topology: tpu7x:2x2x1
jax: 0.10.0
libtpu: 0.0.40
codegen_flags: <defaults>
</compile_context>

<pallas_src>
import functools
import math

import numpy as np
import jax
import jax.numpy as jnp
from jax import lax
from jax.experimental import pallas as pl

# ----------------------------------------------------------------------------
# Scaled-down constants (original: SAMPLE_RATE=16000, 128 mel bins, 10.24 s window,
# ViT-base embed 768 / 12 heads / 12 blocks, 16x16 patches with stride 10).
# ----------------------------------------------------------------------------
SAMPLE_RATE = 1600
FBANK_SAMPLE_STRIDE = 160
PATCH_FBANK_STRIDE = 10
WINDOW_SECS = 1.6
STRIDE_SECS = 1.6
TARGET_LENGTH = int(WINDOW_SECS * SAMPLE_RATE / FBANK_SAMPLE_STRIDE)  # 16 frames / window
N_MELS = 16
FRAME_LEN = 256

EMBED_DIM = 32
NUM_HEADS = 2
HEAD_DIM = EMBED_DIM // NUM_HEADS
DEPTH = 2
MLP_DIM = 4 * EMBED_DIM
PATCH_SIZE = 8
FSTRIDE = 4
TSTRIDE = 4
NF = (N_MELS - PATCH_SIZE) // FSTRIDE + 1          # patches along frequency
NT = (TARGET_LENGTH - PATCH_SIZE) // TSTRIDE + 1   # patches along time
NUM_PATCHES = NF * NT
NUM_TOKENS = NUM_PATCHES + 2                       # cls + dist tokens
TOKENS_PAD = ((NUM_TOKENS + 3) // 4) * 4           # padded token count (nicer sublane count)


# ----------------------------------------------------------------------------
# Small shared helpers
# ----------------------------------------------------------------------------
def _layer_norm(x, g, b, eps=1e-6):
    mu = jnp.mean(x, axis=-1, keepdims=True)
    var = jnp.mean((x - mu) ** 2, axis=-1, keepdims=True)
    return (x - mu) * jax.lax.rsqrt(var + eps) * g + b


def _mm(a, b):
    # bf16 operands, f32 accumulation (MXU-native on v5e/v6e/v7x; elementwise stays f32).
    return jnp.dot(a.astype(jnp.bfloat16), b.astype(jnp.bfloat16),
                   preferred_element_type=jnp.float32)


def _mm_t(a, b):
    # a @ b.T with bf16 operands, f32 accumulation.
    return lax.dot_general(a.astype(jnp.bfloat16), b.astype(jnp.bfloat16),
                           (((1,), (1,)), ((), ())),
                           preferred_element_type=jnp.float32)


# ----------------------------------------------------------------------------
# Pallas kernels
# ----------------------------------------------------------------------------
def _mel_fbank_kernel(frames_ref, mel_ref, o_ref):
    # log-mel-like feature: log(|frames @ mel| + eps) for ALL frames of all samples at once.
    p = jnp.dot(frames_ref[...], mel_ref[...], preferred_element_type=jnp.float32)
    o_ref[...] = jnp.log(jnp.abs(p) + 1e-6)


def mel_fbank(frames, mel_mat):
    # frames: (M, FRAME_LEN) bf16, mel_mat: (FRAME_LEN, N_MELS) bf16 -> (M, N_MELS) f32
    m = frames.shape[0]
    return pl.pallas_call(
        _mel_fbank_kernel,
        out_shape=jax.ShapeDtypeStruct((m, N_MELS), jnp.float32),
    )(frames, mel_mat)


def _ast_fused_kernel(patches_ref, patch_w_ref, scatter_ref, tok_bias_ref, mask_ref,
                      wqkv_ref, wproj_ref, wfc1_ref, wfc2_ref, vec_ref, hs_ref,
                      *, depth, num_heads):
    """Fused AST token path: patch-embed + DEPTH transformer blocks, all samples at once.

    x lives as a (rows, D) = (n*TOKENS_PAD, EMBED_DIM) slab the whole time; the
    block-diagonal additive `mask` keeps attention within each sample's real tokens.
    """
    d = EMBED_DIM
    dh = d // num_heads
    scale = 1.0 / math.sqrt(dh)

    # Patch embedding for every sample at once, then scatter the patch tokens into their
    # (sample, token) rows via a 0/1 matmul and add cls/dist/pos/patch-bias in one shot.
    ptok = _mm(patches_ref[...], patch_w_ref[...])                         # (n*NP, D)
    x = jnp.dot(scatter_ref[...], ptok, preferred_element_type=jnp.float32)
    x = x + tok_bias_ref[...]                                              # (rows, D)
    mask = mask_ref[...]                                                   # (rows, rows)

    for l in range(depth):  # DEPTH is small & static: fully unrolled, weights stay resident
        vec = vec_ref[l]                      # (8, MLP_DIM) packed LN / bias vectors
        ln1_g, ln1_b = vec[0:1, :d], vec[1:2, :d]
        bqkv = vec[2:3, :3 * d]
        bproj = vec[3:4, :d]
        ln2_g, ln2_b = vec[4:5, :d], vec[5:6, :d]
        bfc1 = vec[6:7, :]
        bfc2 = vec[7:8, :d]

        # --- multi-head self-attention (all samples batched via block-diagonal mask) ---
        h = _layer_norm(x, ln1_g, ln1_b)
        qkv = _mm(h, wqkv_ref[l]) + bqkv                                   # (rows, 3D)
        wproj_l = wproj_ref[l]                                             # (H, dh, D)
        proj = bproj
        for hd in range(num_heads):
            q = qkv[:, hd * dh:(hd + 1) * dh]
            k = qkv[:, d + hd * dh:d + (hd + 1) * dh]
            v = qkv[:, 2 * d + hd * dh:2 * d + (hd + 1) * dh]
            s = _mm_t(q, k) * scale + mask                                 # (rows, rows)
            s = s - jnp.max(s, axis=-1, keepdims=True)
            e = jnp.exp(s)
            p = e * pl.reciprocal(jnp.sum(e, axis=-1, keepdims=True), approx=True)
            o_h = _mm(p, v)                                                # (rows, dh)
            # Fold the head-concat into the projection: sum of per-head projections.
            proj = proj + _mm(o_h, wproj_l[hd])
        x = x + proj

        # --- MLP ---
        h2 = _layer_norm(x, ln2_g, ln2_b)
        m = _mm(h2, wfc1_ref[l]) + bfc1
        # TODO(synk): timm ViT uses exact (erf) GELU; tanh approximation for robust lowering.
        m = jax.nn.gelu(m, approximate=True)
        x = x + _mm(m, wfc2_ref[l]) + bfc2

        hs_ref[l] = x                                                      # per-layer hidden state


@functools.lru_cache(maxsize=None)
def _scatter_and_mask(n):
    """Static 0/1 scatter matrix (token placement) and block-diagonal attention mask."""
    rows = n * TOKENS_PAD
    scatter = np.zeros((rows, n * NUM_PATCHES), np.float32)
    mask = np.full((rows, rows), -1e30, np.float32)
    for s in range(n):
        r0 = s * TOKENS_PAD
        mask[r0:r0 + TOKENS_PAD, r0:r0 + NUM_TOKENS] = 0.0     # attend only own real tokens
        for p in range(NUM_PATCHES):
            scatter[r0 + 2 + p, s * NUM_PATCHES + p] = 1.0
    return jnp.asarray(scatter), jnp.asarray(mask)


def ast_fused_forward(patches, params, n):
    # patches: (n*NUM_PATCHES, PATCH_SIZE*PATCH_SIZE) f32 -> hidden states (DEPTH, rows, D)
    rows = n * TOKENS_PAD
    scatter, mask = _scatter_and_mask(n)
    tok_bias_full = jnp.tile(params["tok_bias"], (n, 1))       # (rows, D)
    kernel = functools.partial(_ast_fused_kernel, depth=DEPTH, num_heads=NUM_HEADS)
    return pl.pallas_call(
        kernel,
        out_shape=jax.ShapeDtypeStruct((DEPTH, rows, EMBED_DIM), jnp.float32),
    )(patches.astype(jnp.bfloat16), params["patch_w"], scatter, tok_bias_full, mask,
      params["wqkv"], params["wproj"], params["wfc1"], params["wfc2"], params["vecs"])


# ----------------------------------------------------------------------------
# Model glue (framing / im2col / token reassembly in plain JAX around the two kernels)
# ----------------------------------------------------------------------------
def feature_extractor(segments, mel_mat):
    # segments: (num_seg, B, window) -> (num_seg, B, TARGET_LENGTH, N_MELS)
    # TODO(synk): exact Kaldi fbank (torchaudio.compliance.kaldi.fbank) has no clean Pallas
    # equivalent; approximated as framing + fixed mel-like projection + log, with the
    # projection GEMM and the log fused in one Pallas kernel.
    ns, b, window = segments.shape
    hop = FBANK_SAMPLE_STRIDE
    need = (TARGET_LENGTH - 1) * hop + FRAME_LEN
    seg = segments.reshape(ns * b, window)
    if need > window:
        seg = jnp.pad(seg, ((0, 0), (0, need - window)))
    frames = lax.conv_general_dilated_patches(
        seg[:, None, :], (FRAME_LEN,), (hop,), "VALID")          # (NB, FRAME_LEN, T)
    frames = jnp.transpose(frames, (0, 2, 1)).reshape(ns * b * TARGET_LENGTH, FRAME_LEN)
    fb = mel_fbank(frames.astype(jnp.bfloat16), mel_mat)
    return fb.reshape(ns, b, TARGET_LENGTH, N_MELS)


def ast_model_forward(feats, params):
    # feats: (N, TARGET_LENGTH, N_MELS) — ASTModel input convention (batch, time, freq).
    n = feats.shape[0]
    # PyTorch: x.unsqueeze(1).transpose(2,3) -> NCHW (N,1,F,T); im2col via one XLA patches
    # op, then patch projection + all transformer blocks fused into one Pallas kernel.
    spec = jnp.transpose(feats, (0, 2, 1))[:, None, :, :]        # (N, 1, F, T)
    patches = lax.conv_general_dilated_patches(
        spec, (PATCH_SIZE, PATCH_SIZE), (FSTRIDE, TSTRIDE), "VALID")  # (N, P*P, NF, NT)
    patches = jnp.transpose(patches, (0, 2, 3, 1)).reshape(
        n * NUM_PATCHES, PATCH_SIZE * PATCH_SIZE)                # frequency-major token order

    hs = ast_fused_forward(patches, params, n)                   # (DEPTH, n*TOKENS_PAD, D)
    hs = hs.reshape(DEPTH, n, TOKENS_PAD, EMBED_DIM)[:, :, :NUM_TOKENS, :]
    hidden_states = [hs[l] for l in range(DEPTH)]

    x = _layer_norm(hidden_states[-1], params["norm_g"], params["norm_b"])
    pooled = (x[:, 0, :] + x[:, 1, :]) / 2.0                     # (cls + dist) / 2
    return pooled, hidden_states


def get_downsample_rates(feature_selection):
    if feature_selection == "cls":
        return int(STRIDE_SECS * SAMPLE_RATE)
    return int(FBANK_SAMPLE_STRIDE * PATCH_FBANK_STRIDE)


def upstream_expert_forward(wavs, params, feature_selection="cls"):
    wavs_len = [int(w.shape[0]) for w in wavs]
    max_wav_len = max(wavs_len)
    stride = int(STRIDE_SECS * SAMPLE_RATE)
    window = int(WINDOW_SECS * SAMPLE_RATE)
    start_points = list(range(0, max_wav_len, stride))
    padded_max_wav_len = start_points[-1] + window

    padded_wavs = jnp.stack(
        [jnp.pad(w, (0, padded_max_wav_len - w.shape[0])) for w in wavs], axis=0)
    segments = jnp.stack(
        [padded_wavs[:, s:s + window] for s in start_points], axis=0)  # (num_seg, B, window)

    all_features = feature_extractor(segments, params["mel_mat"])
    num_segment, batch_size, seg_len, hidden = all_features.shape
    flatten_features = all_features.reshape(-1, seg_len, hidden)

    output, hidden_states = ast_model_forward(flatten_features, params)

    if feature_selection == "cls":
        output = output.reshape(num_segment, batch_size, -1)
        output = jnp.transpose(output, (1, 0, 2)).astype(jnp.float32)
        hidden_states = [output]
    else:  # 'hidden_states'
        hidden_states = [
            jnp.transpose(
                h.reshape(num_segment, batch_size, -1, h.shape[-1]), (1, 0, 2, 3)
            ).reshape(batch_size, -1, h.shape[-1]).astype(jnp.float32)
            for h in hidden_states
        ]

    max_h_len = len(range(0, max_wav_len, get_downsample_rates(feature_selection)))
    trimmed = [h[:, :max_h_len, :] for h in hidden_states]
    return {"hidden_states": trimmed}


# ----------------------------------------------------------------------------
# Deterministic synthetic parameters (shapes follow the module's layout, scaled down;
# big GEMM weights stored as bf16, LN / bias vectors packed per layer, cls/dist/pos/patch
# bias folded into one token-bias table).  No checkpoint loading.
# ----------------------------------------------------------------------------
def init_params(key):
    keys = jax.random.split(key, 10)

    def normal(k, shape, scale=0.02):
        return scale * jax.random.normal(k, shape, dtype=jnp.float32)

    d = EMBED_DIM
    bf16 = jnp.bfloat16

    cls_token = normal(keys[2], (d,))
    dist_token = normal(keys[3], (d,))
    pos_embed = normal(keys[4], (NUM_TOKENS, d))
    patch_b = jnp.zeros((d,), jnp.float32)

    # token bias rows: [cls+pos0, dist+pos1, pos[2:]+patch_b, zero pad rows]
    tok_bias = jnp.concatenate([
        (cls_token + pos_embed[0])[None],
        (dist_token + pos_embed[1])[None],
        pos_embed[2:] + patch_b[None],
        jnp.zeros((TOKENS_PAD - NUM_TOKENS, d), jnp.float32),
    ], axis=0)

    # packed per-block vectors (rows): ln1_g, ln1_b, bqkv, bproj, ln2_g, ln2_b, bfc1, bfc2
    def pad_row(v):
        return jnp.pad(v, (0, MLP_DIM - v.shape[0]))

    ones_d = jnp.ones((d,), jnp.float32)
    zeros_d = jnp.zeros((d,), jnp.float32)
    vec = jnp.stack([
        pad_row(ones_d), pad_row(zeros_d),                 # ln1_g, ln1_b
        pad_row(jnp.zeros((3 * d,), jnp.float32)),         # bqkv
        pad_row(zeros_d),                                  # bproj
        pad_row(ones_d), pad_row(zeros_d),                 # ln2_g, ln2_b
        jnp.zeros((MLP_DIM,), jnp.float32),                # bfc1
        pad_row(zeros_d),                                  # bfc2
    ])
    vecs = jnp.tile(vec[None], (DEPTH, 1, 1))

    params = {
        "mel_mat": jnp.abs(normal(keys[0], (FRAME_LEN, N_MELS), scale=1.0)).astype(bf16),
        "patch_w": normal(keys[1], (PATCH_SIZE * PATCH_SIZE, d)).astype(bf16),
        "tok_bias": tok_bias,
        "norm_g": jnp.ones((1, d), jnp.float32),
        "norm_b": jnp.zeros((1, d), jnp.float32),
        "wqkv": normal(keys[5], (DEPTH, d, 3 * d)).astype(bf16),
        # proj weight stored pre-split per head: (DEPTH, H, head_dim, D)
        "wproj": normal(keys[6], (DEPTH, d, d)).reshape(
            DEPTH, NUM_HEADS, HEAD_DIM, d).astype(bf16),
        "wfc1": normal(keys[7], (DEPTH, d, MLP_DIM)).astype(bf16),
        "wfc2": normal(keys[8], (DEPTH, MLP_DIM, d)).astype(bf16),
        "vecs": vecs,
    }
    return params


if __name__ == "__main__":
    key = jax.random.PRNGKey(0)
    pk, wk1, wk2 = jax.random.split(key, 3)
    params = init_params(pk)

    # Two waveforms of different lengths -> 2 segments of 1.6 s @ 1.6 kHz.
    wavs = [
        jax.random.normal(wk1, (4000,), jnp.float32),
        jax.random.normal(wk2, (3000,), jnp.float32),
    ]

    out = upstream_expert_forward(wavs, params, feature_selection="cls")
    for h in out["hidden_states"]:
        jax.block_until_ready(h)
    # cls selection: (batch, num_segments, embed_dim)
    assert out["hidden_states"][0].shape == (2, 2, EMBED_DIM)
    assert out["hidden_states"][0].dtype == jnp.float32

    out_h = upstream_expert_forward(wavs, params, feature_selection="hidden_states")
    for h in out_h["hidden_states"]:
        jax.block_until_ready(h)
    assert len(out_h["hidden_states"]) == DEPTH
    assert out_h["hidden_states"][0].shape == (2, 3, EMBED_DIM)

    print("KERNEL_OK")
</pallas_src>

<mosaic_0001>
module attributes {stable_mosaic.version = 11 : i64} {
  func.func @_mel_fbank_kernel(%arg0: memref<64x256xbf16, #tpu.memory_space<vmem>>, %arg1: memref<256x16xbf16, #tpu.memory_space<vmem>>, %arg2: memref<64x16xf32, #tpu.memory_space<vmem>>) attributes {dimension_semantics = [], scalar_prefetch = 0 : i64, scratch_operands = 0 : i64, tpu.core_type = #tpu.core_type<tc>} {
    %c0 = arith.constant 0 : index
    %c0_0 = arith.constant 0 : index
    %0 = vector.load %arg0[%c0, %c0_0] : memref<64x256xbf16, #tpu.memory_space<vmem>>, vector<64x256xbf16>
    %c0_1 = arith.constant 0 : index
    %c0_2 = arith.constant 0 : index
    %1 = vector.load %arg1[%c0_1, %c0_2] : memref<256x16xbf16, #tpu.memory_space<vmem>>, vector<256x16xbf16>
    %cst = arith.constant dense<0.000000e+00> : vector<64x16xf32>
    %2 = tpu.matmul %0, %1, %cst {dimension_numbers = #tpu.dot_dimension_numbers<[1], [0], [0], [1], [0, 0, 1, 1], [], []>} : vector<64x256xbf16>, vector<256x16xbf16>, vector<64x16xf32> -> vector<64x16xf32>
    %3 = math.absf %2 : vector<64x16xf32>
    %cst_3 = arith.constant 9.99999997E-7 : f32
    %4 = vector.broadcast %cst_3 : f32 to vector<64x16xf32>
    %5 = arith.addf %3, %4 : vector<64x16xf32>
    %6 = math.log %5 : vector<64x16xf32>
    %c0_4 = arith.constant 0 : index
    %c0_5 = arith.constant 0 : index
    %7 = vector.load %arg2[%c0_4, %c0_5] : memref<64x16xf32, #tpu.memory_space<vmem>>, vector<64x16xf32>
    tpu.vector_store %arg2[%c0_4, %c0_5], %6 {strides = array<i32>} : memref<64x16xf32, #tpu.memory_space<vmem>>, vector<64x16xf32>,
    return
  }
}

</mosaic_0001>

<bundles_post_ra>
// kernel: tpu_custom_call.1
= control target key start
LH: loop header
LB: loop body
LE: loop exit
PB: predicated region body
PF: predicated region fallthrough
CT: control target
= control target key end

     0   :  { %vm285_vm0 = vcmask 130048   ;;  %s541_s1 = inlined_call_operand.vmem [shape: bf16[256,16], index: 1, kind: input, shape index: {}]   ;;  %s542_s0 = inlined_call_operand.vmem [shape: bf16[64,256], index: 0, kind: input, shape index: {}]   ;;  %s543_s2 = inlined_call_operand.vmem [shape: f32[64,16], index: 2, kind: output, shape index: {}]  }
   0x1   :  { %v378_v0 = vld [vmem:[%s541_s1 + $0x40] sm:$0xff]   ;;  %v380_v2 = vld [vmem:[%s541_s1 + $0x48] sm:$0xff]   ;;  %v382_v4 = vld [vmem:[%s541_s1 + $0x50] sm:$0xff]  }
   0x2   :  { %v379_v1 = vld [vmem:[%s541_s1] sm:$0xff]   ;;  %322 = vmatprep.subr.bf16.mxu0 %v378_v0  ;;  %362 = vmatprep.subr.bf16.mxu1 %v378_v0  ;;  %v381_v3 = vld [vmem:[%s541_s1 + $0x8] sm:$0xff]   ;;  %v383_v5 = vld [vmem:[%s541_s1 + $0x10] sm:$0xff]  }
   0x3   :  { %323 = vmatpush3.bf16.msra.mxu0 %v379_v1  ;;  %370 = vmatpush3.bf16.msra.mxu1 %v379_v1  ;;  %v384_v6 = vld [vmem:[%s541_s1 + $0x58] sm:$0xff]   ;;  %v386_v8 = vld [vmem:[%s541_s1 + $0x60] sm:$0xff]   ;;  %v388_v10 = vld [vmem:[%s541_s1 + $0x68] sm:$0xff]  }
   0x4   :  { %324 = vmatprep.subr.bf16.mxu0 %v380_v2  ;;  %363 = vmatprep.subr.bf16.mxu1 %v380_v2  ;;  %v385_v7 = vld [vmem:[%s541_s1 + $0x18] sm:$0xff]   ;;  %v387_v9 = vld [vmem:[%s541_s1 + $0x20] sm:$0xff]   ;;  %v389_v13 = vld [vmem:[%s541_s1 + $0x28] sm:$0xff]  }
   0x5   :  { %v396_v11 = vld [vmem:[%s542_s0 + $0x4] ss:$8 sps:$4 sm:$0xff]   ;;  %v390_v14 = vld [vmem:[%s541_s1 + $0x70] sm:$0xff]   ;;  %v392_v16 = vld [vmem:[%s541_s1 + $0x78] sm:$0xff]  }
   0x6   :  { %v399_v12 = vld [vmem:[%s542_s0 + $0x24] ss:$8 sps:$4 sm:$0xff]   ;;  %220 = vmatprep.mubr.bf16.mxu0 %v396_v11  ;;  %v391_v15 = vld [vmem:[%s541_s1 + $0x30] sm:$0xff]   ;;  %v393_v17 = vld [vmem:[%s541_s1 + $0x38] sm:$0xff]  }
   0x7   :  { %325 = vmatpush3.bf16.msra.mxu0 %v381_v3  ;;  %371 = vmatpush3.bf16.msra.mxu1 %v381_v3  ;;  %v394_v18 = vld [vmem:[%s542_s0] ss:$8 sps:$4 sm:$0xff]   ;;  %v400_v20 = vld [vmem:[%s542_s0 + $0x14] ss:$8 sps:$4 sm:$0xff]   ;;  %v404_v22 = vld [vmem:[%s542_s0 + $0x10] ss:$8 sps:$4 sm:$0xff]  }
   0x8   :  { %326 = vmatprep.subr.bf16.mxu0 %v382_v4  ;;  %364 = vmatprep.subr.bf16.mxu1 %v382_v4  ;;  %v397_v19 = vld [vmem:[%s542_s0 + $0x20] ss:$8 sps:$4 sm:$0xff]   ;;  %v402_v21 = vld [vmem:[%s542_s0 + $0x34] ss:$8 sps:$4 sm:$0xff]   ;;  %v405_v23 = vld [vmem:[%s542_s0 + $0x30] ss:$8 sps:$4 sm:$0xff]  }
   0x9   :  { %236 = vmatprep.mubr.bf16.mxu1 %v399_v12 }
   0xb   :  { %327 = vmatpush3.bf16.msra.mxu0 %v383_v5  ;;  %372 = vmatpush3.bf16.msra.mxu1 %v383_v5 }
   0xc   :  { %328 = vmatprep.subr.bf16.mxu0 %v384_v6  ;;  %365 = vmatprep.subr.bf16.mxu1 %v384_v6 }
   0xf   :  { %329 = vmatpush3.bf16.msra.mxu0 %v385_v7  ;;  %373 = vmatpush3.bf16.msra.mxu1 %v385_v7 }
  0x10   :  { %330 = vmatprep.subr.bf16.mxu0 %v386_v8  ;;  %366 = vmatprep.subr.bf16.mxu1 %v386_v8 }
  0x13   :  { %331 = vmatpush3.bf16.msra.mxu0 %v387_v9  ;;  %374 = vmatpush3.bf16.msra.mxu1 %v387_v9 }
  0x14   :  { %332 = vmatprep.subr.bf16.mxu0 %v388_v10  ;;  %367 = vmatprep.subr.bf16.mxu1 %v388_v10 }
  0x17   :  { %333 = vmatpush3.bf16.msra.mxu0 %v389_v13  ;;  %375 = vmatpush3.bf16.msra.mxu1 %v389_v13 }
  0x18   :  { %334 = vmatprep.subr.bf16.mxu0 %v390_v14  ;;  %368 = vmatprep.subr.bf16.mxu1 %v390_v14 }
  0x1b   :  { %335 = vmatpush3.bf16.msra.mxu0 %v391_v15  ;;  %376 = vmatpush3.bf16.msra.mxu1 %v391_v15 }
  0x1c   :  { %336 = vmatprep.subr.bf16.mxu0 %v392_v16  ;;  %369 = vmatprep.subr.bf16.mxu1 %v392_v16 }
  0x1f   :  { %337 = vmatpush3.bf16.msra.mxu0 %v393_v17  ;;  %377 = vmatpush3.bf16.msra.mxu1 %v393_v17 }
  0x22   :  { %221 = vmatmul.mubr.bf16.vlgmr.msra.gmra.mrb[0].mxu0 %v394_v18  ;;  %237 = vmatmul.mubr.bf16.vlgmr.msra.gmra.mrb[0].mxu1 %v397_v19 }
  0x23   :  { %228 = vmatprep.mubr.bf16.mxu0 %v400_v20  ;;  %244 = vmatprep.mubr.bf16.mxu1 %v402_v21 }
  0x2a   :  { %229 = vmatmul.mubr.bf16.gmra.mrb[4].mxu0 %v404_v22  ;;  %245 = vmatmul.mubr.bf16.gmra.mrb[4].mxu1 %v405_v23 }
  0xf5   :  { %v338_v24 = vpop.f32.mrb[0].mxu0  ;;  %v350_v25 = vpop.f32.mrb[0].mxu1 }
  0xf6   :  { %v339_v26 = vpop.f32.mrb[1].mxu0  ;;  %v351_v27 = vpop.f32.mrb[1].mxu1 }
  0xf7   :  { %v340_v28 = vadd.f32 %v339_v26, %v338_v24  ;;  %v352_v29 = vadd.f32 %v351_v27, %v350_v25  ;;  %v341_v30 = vpop.f32.mrb[2].mxu0  ;;  %v353_v31 = vpop.f32.mrb[2].mxu1 }
  0xf8   :  { %v342_v32 = vpop.f32.mrb[3].mxu0  ;;  %v354_v33 = vpop.f32.mrb[3].mxu1 }
  0xf9   :  { %v253_v34 = vand.u32 2147483647, %v340_v28  ;;  %v257_v35 = vand.u32 2147483647, %v352_v29  ;;  %v343_v36 = vadd.f32 %v342_v32, %v341_v30  ;;  %v355_v37 = vadd.f32 %v354_v33, %v353_v31 }
  0xfb   :  { %v261_v38 = vadd.f32 1e-06, %v253_v34  ;;  %v265_v39 = vadd.f32 1e-06, %v257_v35  ;;  %v254_v40 = vand.u32 2147483647, %v343_v36 }
  0xfc   :  { %v258_v41 = vand.u32 2147483647, %v355_v37 }
  0xfd   :  { %406 = vlog2.f32 %v261_v38  ;;  %v262_v42 = vadd.f32 1e-06, %v254_v40  ;;  %v344_v43 = vpop.f32.mrb[4].mxu0  ;;  %v356_v44 = vpop.f32.mrb[4].mxu1 }
  0xfe   :  { %408 = vlog2.f32 %v265_v39  ;;  %v266_v45 = vadd.f32 1e-06, %v258_v41  ;;  %v345_v46 = vpop.f32.mrb[5].mxu0  ;;  %v357_v47 = vpop.f32.mrb[5].mxu1 }
  0xff   :  { %410 = vlog2.f32 %v262_v42  ;;  %v346_v48 = vadd.f32 %v345_v46, %v344_v43  ;;  %v358_v49 = vadd.f32 %v357_v47, %v356_v44  ;;  %v347_v50 = vpop.f32.mrb[6].mxu0  ;;  %v359_v51 = vpop.f32.mrb[6].mxu1 }
 0x100   :  { %412 = vlog2.f32 %v266_v45  ;;  %v348_v52 = vpop.f32.mrb[7].mxu0  ;;  %v360_v53 = vpop.f32.mrb[7].mxu1 }
 0x101   :  { %v255_v54 = vand.u32 2147483647, %v346_v48  ;;  %v259_v55 = vand.u32 2147483647, %v358_v49  ;;  %v349_v56 = vadd.f32 %v348_v52, %v347_v50  ;;  %v361_v57 = vadd.f32 %v360_v53, %v359_v51 }
 0x103   :  { %v263_v58 = vadd.f32 1e-06, %v255_v54  ;;  %v267_v59 = vadd.f32 1e-06, %v259_v55  ;;  %v256_v60 = vand.u32 2147483647, %v349_v56 }
 0x104   :  { %v260_v61 = vand.u32 2147483647, %v361_v57 }
 0x105   :  { %414 = vlog2.f32 %v263_v58  ;;  %v264_v62 = vadd.f32 1e-06, %v256_v60 }
 0x106   :  { %416 = vlog2.f32 %v267_v59  ;;  %v268_v63 = vadd.f32 1e-06, %v260_v61 }
 0x107   :  { %v407_v0 = vpop.eup %406  ;;  %418 = vlog2.f32 %v264_v62 }
 0x108   :  { %v409_v1 = vpop.eup %408  ;;  %v270_v2 = vmul.f32 0.6931472, %v407_v0  ;;  %420 = vlog2.f32 %v268_v63 }
 0x109   :  { %v411_v3 = vpop.eup %410  ;;  %v278_v4 = vmul.f32 0.6931472, %v409_v1 }
 0x10a   :  { %v413_v5 = vpop.eup %412  ;;  %286 = vst.msk [vmem:[%s543_s2] sm:$0xff] %vm285_vm0, %v270_v2  ;;  %v272_v6 = vmul.f32 0.6931472, %v411_v3 }
 0x10b   :  { %290 = vst.msk [vmem:[%s543_s2 + $0x20] sm:$0xff] %vm285_vm0, %v278_v4  ;;  %v280_v7 = vmul.f32 0.6931472, %v413_v5 }
 0x10c   :  { %287 = vst.msk [vmem:[%s543_s2 + $0x8] sm:$0xff] %vm285_vm0, %v272_v6 }
 0x10d   :  { %291 = vst.msk [vmem:[%s543_s2 + $0x28] sm:$0xff] %vm285_vm0, %v280_v7 }
 0x10f   :  { %v415_v8 = vpop.eup %414 }
 0x110   :  { %v417_v9 = vpop.eup %416  ;;  %v274_v10 = vmul.f32 0.6931472, %v415_v8 }
 0x111   :  { %v419_v11 = vpop.eup %418  ;;  %v282_v12 = vmul.f32 0.6931472, %v417_v9 }
 0x112   :  { %v421_v13 = vpop.eup %420  ;;  %288 = vst.msk [vmem:[%s543_s2 + $0x10] sm:$0xff] %vm285_vm0, %v274_v10  ;;  %v276_v14 = vmul.f32 0.6931472, %v419_v11 }
 0x113   :  { %292 = vst.msk [vmem:[%s543_s2 + $0x30] sm:$0xff] %vm285_vm0, %v282_v12  ;;  %v284_v15 = vmul.f32 0.6931472, %v421_v13 }
 0x114   :  { %289 = vst.msk [vmem:[%s543_s2 + $0x18] sm:$0xff] %vm285_vm0, %v276_v14 }
 0x115   :  { %293 = vst.msk [vmem:[%s543_s2 + $0x38] sm:$0xff] %vm285_vm0, %v284_v15 }

</bundles_post_ra>
